<compile_context>
chip_gen: v7x
topology: tpu7x:2x2x1
jax: 0.10.0
libtpu: 0.0.40
codegen_flags: <defaults>
</compile_context>

<pallas_src>
import functools

import jax
import jax.numpy as jnp
from jax.experimental import pallas as pl
from jax.experimental.pallas import tpu as pltpu


_LANE = 128
_SUBLANE = 8


# ----------------------------------------------------------------------------
# Kernels
# ----------------------------------------------------------------------------
def _graph_conv_fused_kernel(adj_ref, x_ref, w_ref, b_ref, o_ref, *,
                             add_self, normalize_embedding, has_bias):
    """One batch element per grid step (grid=(B,), 'parallel')."""
    adj = adj_ref[0]                                           # (Np, Np) bf16
    x = x_ref[0]                                               # (Np, Dinp) bf16
    y = jnp.dot(adj, x, preferred_element_type=jnp.float32)    # (Np, Dinp) f32
    if add_self:
        y = y + x.astype(jnp.float32)
    out = jnp.dot(y, w_ref[...],
                  preferred_element_type=jnp.float32)          # (Np, Dp) f32
    if has_bias:
        out = out + b_ref[...]
    if normalize_embedding:
        # F.normalize(y, p=2, dim=2): y / max(||y||, 1e-12) == y * rsqrt(max(ss, 1e-24))
        ss = jnp.sum(out * out, axis=-1, keepdims=True)
        out = out * jax.lax.rsqrt(jnp.maximum(ss, 1e-24))
    o_ref[0] = out


def _graph_conv_ktiled_kernel(*refs, add_self, normalize_embedding, has_bias):
    """K-tiled GraphConv: grid=(B, Np//tm, Np//tk); acc over K, epilogue at k==last."""
    if add_self:
        adj_ref, x_ref, xs_ref, w_ref, b_ref, o_ref, acc_ref = refs
    else:
        adj_ref, x_ref, w_ref, b_ref, o_ref, acc_ref = refs
        xs_ref = None
    k = pl.program_id(2)

    @pl.when(k == 0)
    def _init():
        acc_ref[...] = jnp.zeros_like(acc_ref)

    # Neighbour aggregation partial sum: (tm, tk) @ (tk, Dinp), bf16 MXU, f32 acc.
    acc_ref[...] += jnp.dot(adj_ref[0], x_ref[0],
                            preferred_element_type=jnp.float32)

    @pl.when(k == pl.num_programs(2) - 1)
    def _epilogue():
        y = acc_ref[...]                                       # (tm, Dinp) f32
        if add_self:
            y = y + xs_ref[0].astype(jnp.float32)
        out = jnp.dot(y, w_ref[...],
                      preferred_element_type=jnp.float32)      # (tm, Dp) f32
        if has_bias:
            out = out + b_ref[...]
        if normalize_embedding:
            ss = jnp.sum(out * out, axis=-1, keepdims=True)
            out = out * jax.lax.rsqrt(jnp.maximum(ss, 1e-24))
        o_ref[0] = out


# ----------------------------------------------------------------------------
# Wrapper helpers
# ----------------------------------------------------------------------------
def _round_up(v, m):
    return (v + m - 1) // m * m


def _vmem_limit_bytes():
    cap = 64 * 1024 * 1024  # conservative default (v7x per-core VMEM)
    try:
        info = pltpu.get_tpu_info()
        cap = int(getattr(info, "vmem_capacity_bytes", cap))
    except Exception:
        pass
    return max(32 * 1024 * 1024, min(int(cap * 3 // 4), 96 * 1024 * 1024))


def _pad_rows_fused(N):
    n128 = _round_up(N, _LANE)
    if n128 <= N + max(32, N // 4):    # small relative padding -> go lane-dense
        return n128
    return _round_up(N, _SUBLANE)


def _fused_step_bytes(Np, Dinp, Dp):
    """Per-grid-step VMEM estimate for the fused path, incl. intermediates."""
    return (2 * Np * Np * 2            # adj tile, bf16, double-buffered
            + 2 * Np * Dinp * 2        # x tile, bf16, double-buffered
            + Dinp * Dp * 4 + Dp * 4   # W + bias (resident)
            + 2 * Np * Dp * 4          # out tile, f32, double-buffered
            + Np * Dinp * 4            # y intermediate
            + Np * Dp * 4)             # pre-store out intermediate


# ----------------------------------------------------------------------------
# Wrapper
# ----------------------------------------------------------------------------
def graph_conv(x, adj, weight, bias=None, *, add_self=False,
               normalize_embedding=False, dropout=0.0, force_tiled=False):
    """Pallas GraphConv forward. x: (B,N,Din), adj: (B,N,N), weight: (Din,Dout)."""
    # TODO(synk): dropout is treated as identity (eval mode); training-mode
    # dropout would use pltpu.prng_seed / pltpu.prng_random_bits in-kernel.
    del dropout
    B, N, Din = x.shape
    Dout = weight.shape[1]

    # Lane-dense / MXU-aligned feature dims: zero columns of x & zero rows of W
    # (Dinp), zero output columns of W & bias (Dp) are numerically exact.
    Dinp = _round_up(max(Din, 1), _LANE)
    Dp = _round_up(max(Dout, 1), _LANE)

    w_p = jnp.pad(weight.astype(jnp.float32), ((0, Dinp - Din), (0, Dp - Dout)))
    if bias is not None:
        b_p = jnp.pad(bias.astype(jnp.float32), (0, Dp - Dout)).reshape(1, Dp)
    else:
        b_p = jnp.zeros((1, Dp), jnp.float32)

    vmem_limit = _vmem_limit_bytes()
    flags = dict(add_self=add_self, normalize_embedding=normalize_embedding,
                 has_bias=bias is not None)

    Np_fused = _pad_rows_fused(N)
    use_fused = (not force_tiled) and (
        _fused_step_bytes(Np_fused, Dinp, Dp) <= int(0.8 * vmem_limit))

    if use_fused:
        Np = Np_fused
    else:
        # K-tiled path: pad rows to a multiple of 128, prefer MXU-filling tiles.
        Np = _round_up(N, _LANE)
        tm = 256 if Np % 256 == 0 else _LANE
        tk = next(t for t in (512, 256, 128) if Np % t == 0)

    # Pad + cast activations. adj is a {0,1} mask -> bf16 exact; accumulation
    # stays f32 inside the kernels.
    adj_p = jnp.pad(adj, ((0, 0), (0, Np - N), (0, Np - N))).astype(jnp.bfloat16)
    x_p = jnp.pad(x, ((0, 0), (0, Np - N), (0, Dinp - Din))).astype(jnp.bfloat16)

    if use_fused:
        out = pl.pallas_call(
            functools.partial(_graph_conv_fused_kernel, **flags),
            out_shape=jax.ShapeDtypeStruct((B, Np, Dp), jnp.float32),
            grid=(B,),
            in_specs=[
                pl.BlockSpec((1, Np, Np), lambda b: (b, 0, 0)),
                pl.BlockSpec((1, Np, Dinp), lambda b: (b, 0, 0)),
                pl.BlockSpec((Dinp, Dp), lambda b: (0, 0)),
                pl.BlockSpec((1, Dp), lambda b: (0, 0)),
            ],
            out_specs=pl.BlockSpec((1, Np, Dp), lambda b: (b, 0, 0)),
            compiler_params=pltpu.CompilerParams(
                dimension_semantics=("parallel",),
                vmem_limit_bytes=vmem_limit),
        )(adj_p, x_p, w_p, b_p)
    else:
        in_specs = [
            pl.BlockSpec((1, tm, tk), lambda b, r, k: (b, r, k)),
            pl.BlockSpec((1, tk, Dinp), lambda b, r, k: (b, k, 0)),
        ]
        args = [adj_p, x_p]
        if add_self:
            # Self rows delivered by the pipeline (no in-kernel dynamic slice).
            in_specs.append(pl.BlockSpec((1, tm, Dinp), lambda b, r, k: (b, r, 0)))
            args.append(x_p)
        in_specs += [
            pl.BlockSpec((Dinp, Dp), lambda b, r, k: (0, 0)),
            pl.BlockSpec((1, Dp), lambda b, r, k: (0, 0)),
        ]
        args += [w_p, b_p]

        out = pl.pallas_call(
            functools.partial(_graph_conv_ktiled_kernel, **flags),
            out_shape=jax.ShapeDtypeStruct((B, Np, Dp), jnp.float32),
            grid=(B, Np // tm, Np // tk),
            in_specs=in_specs,
            out_specs=pl.BlockSpec((1, tm, Dp), lambda b, r, k: (b, r, 0)),
            scratch_shapes=[pltpu.VMEM((tm, Dinp), jnp.float32)],
            compiler_params=pltpu.CompilerParams(
                dimension_semantics=("parallel", "parallel", "arbitrary"),
                vmem_limit_bytes=vmem_limit),
        )(*args)

    return out[:, :N, :Dout]


# ----------------------------------------------------------------------------
# Pure-JAX reference (mirrors the PyTorch module exactly)
# ----------------------------------------------------------------------------
def graph_conv_reference(x, adj, weight, bias, *, add_self, normalize_embedding):
    hp = jax.lax.Precision.HIGHEST
    y = jnp.matmul(adj, x, precision=hp)
    if add_self:
        y = y + x
    y = jnp.matmul(y, weight, precision=hp)
    if bias is not None:
        y = y + bias
    if normalize_embedding:
        norm = jnp.sqrt(jnp.sum(y * y, axis=2, keepdims=True))
        y = y / jnp.maximum(norm, 1e-12)
    return y


def _max_err_ok(a, b, tol):
    """Scale-relative max-abs check (robust to near-zero elements)."""
    scale = jnp.maximum(jnp.max(jnp.abs(b)), 1.0)
    return bool(jnp.max(jnp.abs(a - b)) <= tol * scale)


# ----------------------------------------------------------------------------
if __name__ == "__main__":
    key = jax.random.PRNGKey(0)
    ok = True
    # Small shape exercises the fused path; the larger one (forced) exercises the
    # K-tiled accumulator path with row/Din/Dout padding and multiple K steps.
    for (B, N, Din, Dout) in ((2, 16, 8, 16), (2, 320, 24, 40)):
        key, k_x, k_a, k_w, k_b = jax.random.split(key, 5)
        x = jax.random.normal(k_x, (B, N, Din), jnp.float32)
        a = jax.random.uniform(k_a, (B, N, N), jnp.float32)
        adj = ((a + jnp.swapaxes(a, 1, 2)) * 0.5 > 0.6).astype(jnp.float32)
        gain = jnp.sqrt(2.0)                                  # xavier gain('relu')
        bound = gain * jnp.sqrt(6.0 / (Din + Dout))
        weight = jax.random.uniform(k_w, (Din, Dout), jnp.float32, -bound, bound)
        bias = jax.random.uniform(k_b, (Dout,), jnp.float32, -0.1, 0.1)

        # Reference with the same activation quantization as the kernel (x -> bf16).
        x_q = x.astype(jnp.bfloat16).astype(jnp.float32)

        for cfg in (dict(add_self=False, normalize_embedding=True),   # diffpool usage
                    dict(add_self=True, normalize_embedding=False)):
            ref_f32 = graph_conv_reference(x, adj, weight, bias, **cfg)
            ref_q = graph_conv_reference(x_q, adj, weight, bias, **cfg)

            y_fused = graph_conv(x, adj, weight, bias, **cfg)
            y_tiled = graph_conv(x, adj, weight, bias, force_tiled=True, **cfg)
            y_fused, y_tiled = jax.block_until_ready((y_fused, y_tiled))

            ok &= y_fused.shape == (B, N, Dout)
            ok &= y_tiled.shape == (B, N, Dout)
            ok &= bool(jnp.all(jnp.isfinite(y_fused)))
            ok &= bool(jnp.all(jnp.isfinite(y_tiled)))
            # Tight check vs dtype-matched reference, loose sanity vs full-f32 ref.
            ok &= _max_err_ok(y_fused, ref_q, 1e-2)
            ok &= _max_err_ok(y_tiled, ref_q, 1e-2)
            ok &= _max_err_ok(y_fused, ref_f32, 3e-2)
            ok &= _max_err_ok(y_tiled, ref_f32, 3e-2)

    assert ok
    print("KERNEL_OK")
</pallas_src>

<mosaic_0001>
module attributes {stable_mosaic.version = 11 : i64} {
  func.func @_graph_conv_fused_kernel(%arg0: i32, %arg1: memref<1x16x16xbf16, #tpu.memory_space<vmem>>, %arg2: memref<1x16x128xbf16, #tpu.memory_space<vmem>>, %arg3: memref<128x128xf32, #tpu.memory_space<vmem>>, %arg4: memref<1x128xf32, #tpu.memory_space<vmem>>, %arg5: memref<1x16x128xf32, #tpu.memory_space<vmem>>) attributes {dimension_semantics = [#tpu.dimension_semantics<parallel>], iteration_bounds = array<i64: 2>, scalar_prefetch = 0 : i64, scratch_operands = 0 : i64, tpu.core_type = #tpu.core_type<tc>, window_params = [{transform_indices = @transform_0, window_bounds = array<i64: 1, 16, 16>}, {transform_indices = @transform_1, window_bounds = array<i64: 1, 16, 128>}, {pipeline_mode = #tpu.pipeline_mode<synchronous>, transform_indices = @transform_2, window_bounds = array<i64: 128, 128>}, {pipeline_mode = #tpu.pipeline_mode<synchronous>, transform_indices = @transform_3, window_bounds = array<i64: 1, 128>}, {transform_indices = @transform_4, window_bounds = array<i64: 1, 16, 128>}]} {
    %c0 = arith.constant 0 : index
    %c0_0 = arith.constant 0 : index
    %c0_1 = arith.constant 0 : index
    %0 = vector.load %arg1[%c0, %c0_0, %c0_1] : memref<1x16x16xbf16, #tpu.memory_space<vmem>>, vector<1x16x16xbf16>
    %1 = vector.shape_cast %0 : vector<1x16x16xbf16> to vector<16x16xbf16>
    %c0_2 = arith.constant 0 : index
    %c0_3 = arith.constant 0 : index
    %c0_4 = arith.constant 0 : index
    %2 = vector.load %arg2[%c0_2, %c0_3, %c0_4] : memref<1x16x128xbf16, #tpu.memory_space<vmem>>, vector<1x16x128xbf16>
    %3 = vector.shape_cast %2 : vector<1x16x128xbf16> to vector<16x128xbf16>
    %cst = arith.constant dense<0.000000e+00> : vector<16x128xf32>
    %4 = tpu.matmul %1, %3, %cst {dimension_numbers = #tpu.dot_dimension_numbers<[1], [0], [0], [1], [0, 0, 1, 1], [], []>} : vector<16x16xbf16>, vector<16x128xbf16>, vector<16x128xf32> -> vector<16x128xf32>
    %c0_5 = arith.constant 0 : index
    %c0_6 = arith.constant 0 : index
    %5 = vector.load %arg3[%c0_5, %c0_6] : memref<128x128xf32, #tpu.memory_space<vmem>>, vector<128x128xf32>
    %cst_7 = arith.constant dense<0.000000e+00> : vector<16x128xf32>
    %6 = tpu.matmul %4, %5, %cst_7 {dimension_numbers = #tpu.dot_dimension_numbers<[1], [0], [0], [1], [0, 0, 1, 1], [], []>} : vector<16x128xf32>, vector<128x128xf32>, vector<16x128xf32> -> vector<16x128xf32>
    %c0_8 = arith.constant 0 : index
    %c0_9 = arith.constant 0 : index
    %7 = vector.load %arg4[%c0_8, %c0_9] : memref<1x128xf32, #tpu.memory_space<vmem>>, vector<1x128xf32>
    %8 = vector.broadcast %7 : vector<1x128xf32> to vector<16x128xf32>
    %9 = arith.addf %6, %8 : vector<16x128xf32>
    %10 = arith.mulf %9, %9 : vector<16x128xf32>
    %cst_10 = arith.constant dense<0.000000e+00> : vector<16xf32>
    %11 = vector.multi_reduction <add>, %10, %cst_10 [1] : vector<16x128xf32> to vector<16xf32>
    %12 = vector.shape_cast %11 : vector<16xf32> to vector<16x1xf32>
    %cst_11 = arith.constant 1.000000e-24 : f32
    %13 = vector.broadcast %cst_11 : f32 to vector<16x1xf32>
    %14 = arith.maximumf %12, %13 : vector<16x1xf32>
    %15 = math.rsqrt %14 : vector<16x1xf32>
    %16 = vector.broadcast %15 : vector<16x1xf32> to vector<16x128xf32>
    %17 = arith.mulf %9, %16 : vector<16x128xf32>
    %c0_12 = arith.constant 0 : index
    %c0_13 = arith.constant 0 : index
    %c0_14 = arith.constant 0 : index
    %18 = vector.load %arg5[%c0_12, %c0_13, %c0_14] : memref<1x16x128xf32, #tpu.memory_space<vmem>>, vector<1x16x128xf32>
    %19 = vector.shape_cast %18 : vector<1x16x128xf32> to vector<16x128xf32>
    %20 = vector.shape_cast %17 : vector<16x128xf32> to vector<1x16x128xf32>
    tpu.vector_store %arg5[%c0_12, %c0_13, %c0_14], %20 {strides = array<i32>} : memref<1x16x128xf32, #tpu.memory_space<vmem>>, vector<1x16x128xf32>,
    return
  }
  func.func @transform_0(%arg0: i32) -> (i32, i32, i32) {
    %c0_i32 = arith.constant 0 : i32
    %c0_i32_0 = arith.constant 0 : i32
    %c0_i32_1 = arith.constant 0 : i32
    return %arg0, %c0_i32, %c0_i32_0 : i32, i32, i32
  }
  func.func @transform_1(%arg0: i32) -> (i32, i32, i32) {
    %c0_i32 = arith.constant 0 : i32
    %c0_i32_0 = arith.constant 0 : i32
    %c0_i32_1 = arith.constant 0 : i32
    return %arg0, %c0_i32, %c0_i32_0 : i32, i32, i32
  }
  func.func @transform_2(%arg0: i32) -> (i32, i32) {
    %c0_i32 = arith.constant 0 : i32
    %c0_i32_0 = arith.constant 0 : i32
    %c0_i32_1 = arith.constant 0 : i32
    return %c0_i32, %c0_i32_0 : i32, i32
  }
  func.func @transform_3(%arg0: i32) -> (i32, i32) {
    %c0_i32 = arith.constant 0 : i32
    %c0_i32_0 = arith.constant 0 : i32
    %c0_i32_1 = arith.constant 0 : i32
    return %c0_i32, %c0_i32_0 : i32, i32
  }
  func.func @transform_4(%arg0: i32) -> (i32, i32, i32) {
    %c0_i32 = arith.constant 0 : i32
    %c0_i32_0 = arith.constant 0 : i32
    %c0_i32_1 = arith.constant 0 : i32
    return %arg0, %c0_i32, %c0_i32_0 : i32, i32, i32
  }
}

</mosaic_0001>

<bundles_post_ra>
// kernel: tpu_custom_call.1
= control target key start
LH: loop header
LB: loop body
LE: loop exit
PB: predicated region body
PF: predicated region fallthrough
CT: control target
= control target key end

     0   :  { %s1217_s0 = inlined_call_operand.hbm [shape: bf16[2,16,16], index: 0, kind: input, shape index: {}]   ;;  %s1218_s1 = inlined_call_operand.hbm [shape: bf16[2,16,128], index: 1, kind: input, shape index: {}]   ;;  %s1219_s2 = inlined_call_operand.hbm [shape: f32[128,128], index: 2, kind: input, shape index: {}]   ;;  %s1220_s3 = inlined_call_operand.vmem [shape: f32[1,128], index: 3, kind: input, shape index: {}]   ;;  %s1221_s4 = inlined_call_operand.hbm [shape: f32[2,16,128], index: 4, kind: output, shape index: {}]  }
   0x1   :  { %1225 = sst [smem:[#allocation13_spill]] %s1217_s0 }
   0x2   :  { %9 = vsyncpa [#allocation3], 0 }
   0x3   :  { %11 = vsyncpa [#allocation3 + $0x1], 0 }
   0x4   :  { %12 = vsyncpa [#allocation6], 0 }
   0x5   :  { %14 = vsyncpa [#allocation6 + $0x1], 0 }
   0x6   :  { %15 = vsyncpa [#allocation4], 0 }
   0x7   :  { %17 = vsyncpa [#allocation4 + $0x1], 0  ;;  %s959_s15 = smov 0   ;;  %s961_s16 = smov 0  }
   0x8   :  { %s963_s17 = smov 0   ;;  %s965_s18 = smov 0  }
   0x9 LB: > { %s980_s19 = sadd.s32 4294967295, %s920_s18   ;;  %s562_s20 = sadd.s32 4294967294, %s920_s18   ;;  %s920_s18 = sphi %s965_s18, %s1243_s18   ;;  %s916_s17 = sphi %s963_s17, %s1242_s17   ;;  %s912_s16 = sphi %s961_s16, %s1241_s16   ;;  %s908_s15 = sphi %s959_s15, %s1240_s15  }
   0xa   : > { %p43_p0 = scmp.ne.s32.totalorder %s912_s16, %s908_s15  ;;  %p1222_p1 = scmp.eq.s32.totalorder %s980_s19, 0 }
   0xb   : > { %p141_p3 = scmp.eq.s32.totalorder %s562_s20, 1  ;;  %p563_p5 = scmp.ge.s32.totalorder %s920_s18, 1 }
   0xc   : > { %p989_p4 = por %p1222_p1, %p43_p0  ;;  %p148_p7 = scmp.lt.s32.totalorder %s920_s18, 3 }
   0xd   : > { %p994_p6 = por %p141_p3, %p43_p0  ;;  %s922_s24 = smov [#allocation7]  }
   0xe   : > { %s1226_s21 = scalar_select %p989_p4, 1, 0 }
   0xf   : > { %s1227_s22 = scalar_select %p994_p6, 1, 0 }
  0x10   : > { %p999_p8 = pnand %p563_p5, %p148_p7  ;;  %s160_s25 = sshll.u32 %s922_s24, 4  ;;  %s1003_s25 = int_to_ptr.vmem [resolvable:$true] %s160_s25 }
  0x11   : > { %s1015_s27 = sadd.s32 1, %s920_s18   ;;  %s30_s28 = sadd.s32 1, %s916_s17 }
  0x12   : > { %s1228_s23 = scalar_select %p999_p8, 1, 0 }
  0x13   : > { %p692_p9 = pneg %p999_p8  ;;  %s27_s29 = ssub.s32 %s920_s18, %s1015_s27 }
  0x14   : > { %s758_s6 = scalar_lea.hbm %s1219_s2, 2048 }
  0x15   : > { %p1010_p11 = pnand %p692_p9, %p1222_p1  ;;  %p759_p12 = scmp.ne.s32.totalorder %s1219_s2, %s758_s6 }
  0x16   : > { %p765_p5 = scmp.lt.u32.totalorder %s758_s6, %s1219_s2 }
  0x17   : > { %p760_p13 = pneg %p1010_p11 }
  0x19   : > { %p761_p0 = pnand %p760_p13, %p759_p12 }
  0x1b   : > { %p762_p3 = pneg %p761_p0 }
  0x1d   : > { %p767_p7 = pnand %p765_p5, %p762_p3 }
  0x1f   : > { %770 = shalt.err (!%p767_p7)
}
  0x20   : > { %s771_s11 = scalar_lea.vmem %s1003_s25, 2048  ;;  %p779_p2 = scmp.lt.s32.totalorder %s1003_s25, %s1003_s25 }
  0x21   : > { %p772_p9 = scmp.ne.s32.totalorder %s1003_s25, %s771_s11  ;;  %p780_p6 = scmp.lt.s32.totalorder %s771_s11, %s771_s11 }
  0x23   : > { %p774_p10 = pnand %p772_p9, %p760_p13  ;;  %p781_p4 = por %p780_p6, %p779_p2 }
  0x25   : > { %p775_p1 = pneg %p774_p10 }
  0x27   : > { %p782_p8 = pnand %p781_p4, %p775_p1 }
  0x29   : > { %785 = shalt.err (!%p782_p8)
}
  0x2a   : > { %s923_s12 = smov 128   ;;  %s924_s13 = smov 8  }
  0x2b   : > { %695 = dma.hbm_to_vmem [thread:$0]  (!%p1010_p11), %s1219_s2, 2048, %s1003_s25, [#allocation6], %s923_s12, %s923_s12, %s924_s13  }
  0x2c   : > { %p28_p1 = scmp.eq.s32.totalorder %s27_s29, 0  ;;  %p37_p2 = scmp.ne.s32.totalorder %s916_s17, %s912_s16 }
  0x2d   : > { %p38_p4 = scmp.eq.s32.totalorder %s920_s18, 0  ;;  %p708_p6 = scmp.lt.s32.totalorder %s920_s18, 2 }
  0x2e   : > { %s1046_s24 = scalar_select %p28_p1, %s916_s17, %s30_s28  }
  0x2f   : > { %p39_p8 = por %p38_p4, %p37_p2  ;;  %p1230_p10 = scmp.eq.s32.totalorder %s980_s19, 1 }
  0x30   : > { %s177_s5 = sand.u32 1, %s916_s17   ;;  %s586_s6 = sshll.u32 %s920_s18, 7 }
  0x31   : > { %p1050_p12 = por %p1230_p10, %p37_p2  ;;  %s1056_s7 = sshll.u32 %s177_s5, 3 }
  0x32   : > { %s1232_s0 = sld [smem:[#allocation13_spill]]  ;;  %s181_s28 = scalar_lea.vmem [#allocation2], %s1056_s7 }
  0x33   : > { %s188_s29 = sshll.u32 %s181_s28, 4  ;;  %p1066_p11 = pnand %p708_p6, %p39_p8  ;;  %s1070_s29 = int_to_ptr.vmem [resolvable:$true] %s188_s29 }
  0x34   : > { %s1072_s10 = scalar_lea.sflag [#allocation3], %s177_s5 }
  0x35   : > { %p788_p0 = pneg %p1066_p11 }
  0x38   : > { %s1063_s25 = scalar_lea.hbm %s1232_s0, %s586_s6  ;;  %s791_s14 = scalar_lea.hbm %s1232_s0, 256 }
  0x39   : > { %s786_s11 = scalar_lea.hbm %s1063_s25, 128  ;;  %p792_p7 = scmp.lt.u32.totalorder %s1063_s25, %s1232_s0 }
  0x3a   : > { %p787_p13 = scmp.ne.s32.totalorder %s1063_s25, %s786_s11  ;;  %p793_p9 = scmp.lt.u32.totalorder %s791_s14, %s786_s11 }
  0x3b   : > { %p795_p2 = scmp.lt.u32.totalorder %s786_s11, %s1063_s25 }
  0x3c   : > { %p789_p3 = pnand %p788_p0, %p787_p13  ;;  %p794_p1 = por %p793_p9, %p792_p7 }
  0x3e   : > { %p790_p5 = pneg %p789_p3  ;;  %p796_p4 = por %p795_p2, %p794_p1 }
  0x40   : > { %p797_p6 = pnand %p796_p4, %p790_p5 }
  0x42   : > { %800 = shalt.err (!%p797_p6)
}
  0x43   : > { %s801_s5 = scalar_lea.vmem %s1070_s29, 128  ;;  %s925_s8 = smov [#allocation2]  }
  0x44   : > { %p802_p8 = scmp.ne.s32.totalorder %s1070_s29, %s801_s5  ;;  %s806_s28 = sshll.u32 %s925_s8, 4  ;;  %s807_s28 = int_to_ptr.vmem [resolvable:$false] %s806_s28 }
  0x45   : > { %s808_s12 = scalar_lea.vmem %s807_s28, 256  ;;  %p809_p3 = scmp.lt.s32.totalorder %s1070_s29, %s807_s28 }
  0x46   : > { %p804_p10 = pnand %p802_p8, %p788_p0  ;;  %p810_p7 = scmp.lt.s32.totalorder %s808_s12, %s801_s5 }
  0x48   : > { %p805_p13 = pneg %p804_p10  ;;  %p811_p9 = por %p810_p7, %p809_p3 }
  0x4a   : > { %p812_p1 = pnand %p811_p9, %p805_p13 }
  0x4c   : > { %815 = shalt.err (!%p812_p1)
}
  0x4d   : > { %s926_s11 = smov 64   ;;  %s927_s13 = smov 4  }
  0x4e   : > { %699 = dma.hbm_to_vmem [thread:$0]  (!%p1066_p11), %s1063_s25, 128, %s1070_s29, %s1072_s10, %s926_s11, %s926_s11, %s927_s13  }
  0x4f   : > { %s1108_s26 = scalar_lea.hbm %s1218_s1, %s586_s6  ;;  %s202_s5 = scalar_lea.vmem [#allocation5], %s1056_s7 }
  0x50   : > { %s209_s8 = sshll.u32 %s202_s5, 4  ;;  %s198_s28 = sand.u32 1, %s920_s18   ;;  %s1112_s8 = int_to_ptr.vmem [resolvable:$true] %s209_s8 }
  0x51   : > { %s1114_s12 = scalar_lea.sflag [#allocation6], %s198_s28  ;;  %s816_s0 = scalar_lea.hbm %s1108_s26, 128 }
  0x52   : > { %p817_p5 = scmp.ne.s32.totalorder %s1108_s26, %s816_s0  ;;  %s821_s29 = scalar_lea.hbm %s1218_s1, 256 }
  0x53   : > { %p822_p6 = scmp.lt.u32.totalorder %s1108_s26, %s1218_s1  ;;  %p823_p8 = scmp.lt.u32.totalorder %s821_s29, %s816_s0 }
  0x54   : > { %p819_p2 = pnand %p817_p5, %p788_p0  ;;  %p825_p13 = scmp.lt.u32.totalorder %s816_s0, %s1108_s26 }
  0x55   : > { %p824_p10 = por %p823_p8, %p822_p6 }
  0x56   : > { %p820_p4 = pneg %p819_p2 }
  0x57   : > { %p826_p3 = por %p825_p13, %p824_p10 }
  0x59   : > { %p827_p7 = pnand %p826_p3, %p820_p4 }
  0x5b   : > { %830 = shalt.err (!%p827_p7)
}
  0x5c   : > { %s831_s7 = scalar_lea.vmem %s1112_s8, 128  ;;  %s928_s20 = smov [#allocation5]  }
  0x5d   : > { %p832_p9 = scmp.ne.s32.totalorder %s1112_s8, %s831_s7  ;;  %s836_s5 = sshll.u32 %s928_s20, 4  ;;  %s837_s5 = int_to_ptr.vmem [resolvable:$false] %s836_s5 }
  0x5e   : > { %s838_s28 = scalar_lea.vmem %s837_s5, 256  ;;  %p839_p2 = scmp.lt.s32.totalorder %s1112_s8, %s837_s5 }
  0x5f   : > { %p834_p1 = pnand %p832_p9, %p788_p0  ;;  %p840_p6 = scmp.lt.s32.totalorder %s838_s28, %s831_s7 }
  0x61   : > { %p835_p5 = pneg %p834_p1  ;;  %p841_p8 = por %p840_p6, %p839_p2 }
  0x63   : > { %p842_p10 = pnand %p841_p8, %p835_p5 }
  0x65   : > { %845 = shalt.err (!%p842_p10)
}
  0x66   : > { %702 = dma.hbm_to_vmem [thread:$0]  (!%p1066_p11), %s1108_s26, 128, %s1112_s8, %s1114_s12, %s926_s11, %s926_s11, %s927_s13  }
  0x67   : > { %p1234_p0 = scmp.ne.s32.totalorder %s1228_s23, 0 }
  0x68   : > { %s1146_s0 = sand.u32 (!%p1234_p0), 1, %s912_s16   ;;  %p1235_p4 = scmp.ne.s32.totalorder (!%p1234_p0), %s1226_s21, 0 }
  0x69   : > { %221 = sbr.rel (%p1234_p0) target bundleno = 731 (0x2db), region = 36  ;;  %s573_s25 = sshll.u32 (!%p1234_p0), %s1146_s0, 3 }
  0x6a   : > { %s224_s6 = scalar_lea.sflag (!%p1234_p0), [#allocation3], %s1146_s0  ;;  %s227_s29 = scalar_lea.vmem (!%p1234_p0), [#allocation2], %s573_s25 }
  0x70   : > { %891 = dma.done.wait (%p1235_p4), %s224_s6, 128  }
  0x71   : > { %893 = vsyncadd (%p1235_p4), %s224_s6, 4294967168  ;;  %s232_s9 = sand.u32 1, %s980_s19   ;;  %s236_s23 = scalar_lea.vmem [#allocation5], %s573_s25 }
  0x72   : > { %s233_s11 = scalar_lea.sflag [#allocation6], %s232_s9 }
  0x73   : > { %895 = dma.done.wait (%p1235_p4), %s233_s11, 128  }
  0x74   : > { %897 = vsyncadd (%p1235_p4), %s233_s11, 4294967168  ;;  %p1236_p11 = scmp.eq.s32.totalorder %s980_s19, 0 }
  0x76   : > { %899 = dma.done.wait (%p1236_p11), [#allocation6], 2048   ;;  %p1237_p13 = pmov %p1236_p11 }
  0x77   : > { %v929_v0 = vmov 0.0   ;;  %vm930_vm0 = vmmov 0   ;;  %v752_v1 = vld [vmem:[%s236_s23] sm:$0xff]   ;;  %v753_v2 = vld [vmem:[%s227_s29] sm:$0xff]   ;;  %vm286_vm1 = vcmask 130048   ;;  %s576_s26 = sshll.u32 %s1146_s0, 4 }
  0x78   : > { %901 = vsyncadd (%p1237_p13), [#allocation6], 4294965248  ;;  %609 = vmatprep.subr.bf16.mxu0 %v929_v0  ;;  %611 = vmatprep.mubr.msk.bf16.mxu0 %vm930_vm0, %v929_v0  ;;  %v331_v3 = vld [vmem:[#allocation7] sm:$0xff]  ;;  %v332_v4 = vld [vmem:[#allocation7 + $0x8] sm:$0xff]  ;;  %s588_s8 = sshll.u32 %s980_s19, 8  ;;  %s269_s12 = scalar_lea.vmem [#allocation8], %s576_s26 }
  0x79   : > { %610 = vmatpush3.bf16.msra.mxu0 %v752_v1  ;;  %v333_v5 = vld [vmem:[#allocation7 + $0x10] sm:$0xff]  ;;  %v650_v6 = vpack.c.bf16 %v332_v4, %v331_v3  ;;  %v334_v7 = vld [vmem:[#allocation7 + $0x18] sm:$0xff]  ;;  %v335_v9 = vld [vmem:[#allocation7 + $0x20] sm:$0xff]  ;;  %s457_s10 = sshll.u32 %s269_s12, 4  ;;  %s1171_s20 = scalar_lea.hbm %s1221_s4, %s588_s8  ;;  %s1173_s10 = int_to_ptr.vmem [resolvable:$true] %s457_s10 }
  0x7a   : > { %v654_v8 = vpack.c.bf16 %v334_v7, %v333_v5  ;;  %v336_v10 = vld [vmem:[#allocation7 + $0x28] sm:$0xff]  ;;  %v337_v12 = vld [vmem:[#allocation7 + $0x30] sm:$0xff]  ;;  %v338_v13 = vld [vmem:[#allocation7 + $0x38] sm:$0xff]  ;;  %s444_s5 = scalar_lea.sflag [#allocation4], %s1146_s0  ;;  %s846_s28 = scalar_lea.vmem %s1173_s10, 256 }
  0x7b   : > { %651 = vmatprep.subr.bf16.mxu1 %v650_v6  ;;  %v658_v11 = vpack.c.bf16 %v336_v10, %v335_v9  ;;  %v662_v14 = vpack.c.bf16 %v338_v13, %v337_v12  ;;  %v339_v15 = vld [vmem:[#allocation7 + $0x40] sm:$0xff]  ;;  %v340_v16 = vld [vmem:[#allocation7 + $0x48] sm:$0xff]  ;;  %v341_v18 = vld [vmem:[#allocation7 + $0x50] sm:$0xff]  ;;  %p847_p3 = scmp.ne.s32.totalorder %s1173_s10, %s846_s28  ;;  %s931_s19 = smov [#allocation8]  }
  0x7c   : > { %612 = vmatmul.mubr.msk.bf16.vlgmr.msra.gmra.mrb[0].mxu0 %vm286_vm1, %v753_v2  ;;  %653 = vmatpush3.bf16.msra.mxu1 %v650_v6  ;;  %v666_v17 = vpack.c.bf16 %v340_v16, %v339_v15  ;;  %v342_v19 = vld [vmem:[#allocation7 + $0x58] sm:$0xff]  ;;  %v343_v21 = vld [vmem:[#allocation7 + $0x60] sm:$0xff]  ;;  %v344_v22 = vld [vmem:[#allocation7 + $0x68] sm:$0xff]  ;;  %s850_s25 = sshll.u32 %s931_s19, 4  ;;  %s851_s25 = int_to_ptr.vmem [resolvable:$false] %s850_s25 }
  0x7d   : > { %655 = vmatprep.subr.bf16.mxu1 %v654_v8  ;;  %v670_v20 = vpack.c.bf16 %v342_v19, %v341_v18  ;;  %v674_v23 = vpack.c.bf16 %v344_v22, %v343_v21  ;;  %v345_v24 = vld [vmem:[#allocation7 + $0x70] sm:$0xff]  ;;  %v346_v25 = vld [vmem:[#allocation7 + $0x78] sm:$0xff]  ;;  %v580_v31 = vld [vmem:[%s1220_s3] ss:$0 sm:$0xff]  ;;  %p848_p7 = pnand %p847_p3, %p1050_p12  ;;  %s852_s6 = scalar_lea.vmem %s851_s25, 512 }
  0x7e   : > { %v678_v26 = vpack.c.bf16 %v346_v25, %v345_v24  ;;  %p853_p1 = scmp.lt.s32.totalorder %s1173_s10, %s851_s25  ;;  %p854_p5 = scmp.lt.s32.totalorder %s852_s6, %s846_s28 }
  0x7f   : > { %p849_p9 = pneg %p848_p7 }
  0x80   : > { %657 = vmatpush3.bf16.msra.mxu1 %v654_v8  ;;  %p855_p2 = por %p854_p5, %p853_p1 }
  0x81   : > { %659 = vmatprep.subr.bf16.mxu1 %v658_v11 }
  0x82   : > { %p856_p6 = pnand %p855_p2, %p849_p9 }
  0x84   : > { %661 = vmatpush3.bf16.msra.mxu1 %v658_v11 }
  0x85   : > { %663 = vmatprep.subr.bf16.mxu1 %v662_v14 }
  0x88   : > { %665 = vmatpush3.bf16.msra.mxu1 %v662_v14 }
  0x89   : > { %667 = vmatprep.subr.bf16.mxu1 %v666_v17 }
  0x8c   : > { %669 = vmatpush3.bf16.msra.mxu1 %v666_v17 }
  0x8d   : > { %671 = vmatprep.subr.bf16.mxu1 %v670_v20 }
  0x90   : > { %673 = vmatpush3.bf16.msra.mxu1 %v670_v20 }
  0x91   : > { %675 = vmatprep.subr.bf16.mxu1 %v674_v23 }
  0x94   : > { %677 = vmatpush3.bf16.msra.mxu1 %v674_v23 }
  0x95   : > { %679 = vmatprep.subr.bf16.mxu1 %v678_v26 }
  0x98   : > { %681 = vmatpush3.bf16.msra.mxu1 %v678_v26 }
 0x14f   : > { %v324_v27 = vpop.f32.mrb[0].mxu0 }
 0x150   : > { %v613_v28 = vpop.f32.mrb[1].mxu0  ;;  %647 = vmatprep.mubr.f32.mxu1 %v324_v27 }
 0x151   : > { %v327_v29 = vpop.f32.mrb[2].mxu0 }
 0x152   : > { %v614_v30 = vpop.f32.mrb[3].mxu0  ;;  %648 = vmatmul.mubr.f32.vlgmr.msra.gmra.mrb[0].mxu1 %v327_v29 }
 0x225   : > { %v649_v32 = vpop.f32.mrb[0].mxu1 }
 0x226   : > { %v420_v33 = vpop.f32.mrb[1].mxu1  ;;  %v426_v35 = vadd.f32 %v649_v32, %v580_v31 }
 0x227   : > { %v421_v34 = vadd.f32 %v580_v31, %v420_v33 }
 0x228   : > { %v430_v37 = vmul.f32 %v426_v35, %v426_v35 }
 0x229   : > { %v429_v36 = vmul.f32 %v421_v34, %v421_v34 }
 0x22b   : > { %431 = vadd.xlane.f32.xlu0 %v429_v36 }
 0x22f   : > { %433 = vadd.xlane.f32.xlu0 %v430_v37 }
 0x2b8   : > { %v432_v38 = vpop.xlane.xlu0 %431 }
 0x2b9   : > { %v435_v39 = vmax.f32 %v432_v38, 1e-24 }
 0x2bb   : > { %754 = vrsqrt.f32 %v435_v39 }
 0x2bc   : > { %v434_v40 = vpop.xlane.xlu0 %433 }
 0x2bd   : > { %v436_v41 = vmax.f32 %v434_v40, 1e-24 }
 0x2bf   : > { %756 = vrsqrt.f32 %v436_v41 }
 0x2c5   : > { %v755_v42 = vpop.eup %754 }
 0x2c6   : > { %v439_v43 = vmul.f32 %v755_v42, %v421_v34 }
 0x2c8   : > { %441 = vst [vmem:[%s269_s12] sm:$0xff] %v439_v43 }
 0x2c9   : > { %v757_v44 = vpop.eup %756 }
 0x2ca   : > { %v440_v45 = vmul.f32 %v757_v44, %v426_v35 }
 0x2cc   : > { %442 = vst [vmem:[%s269_s12 + $0x8] sm:$0xff] %v440_v45 }
 0x2cd   : > { %859 = shalt.err (!%p856_p6)
}
 0x2ce   : > { %s860_s29 = scalar_lea.hbm %s1171_s20, 256  ;;  %s864_s23 = scalar_lea.hbm %s1221_s4, 512 }
 0x2cf   : > { %p861_p8 = scmp.ne.s32.totalorder %s1171_s20, %s860_s29  ;;  %p865_p4 = scmp.lt.u32.totalorder %s1171_s20, %s1221_s4 }
 0x2d0   : > { %p866_p11 = scmp.lt.u32.totalorder %s864_s23, %s860_s29  ;;  %p868_p3 = scmp.lt.u32.totalorder %s860_s29, %s1171_s20 }
 0x2d1   : > { %p862_p10 = pnand %p861_p8, %p1050_p12 }
 0x2d2   : > { %p867_p13 = por %p866_p11, %p865_p4 }
 0x2d3   : > { %p863_p0 = pneg %p862_p10 }
 0x2d4   : > { %p869_p7 = por %p868_p3, %p867_p13 }
 0x2d6   : > { %p870_p9 = pnand %p869_p7, %p863_p0 }
 0x2d8   : > { %873 = shalt.err (!%p870_p9)
}
 0x2d9   : > { %s932_s26 = smov 128   ;;  %s933_s8 = smov 8  }
 0x2da   : > { %690 = dma.vmem_to_hbm [thread:$0]  (%p1050_p12), %s1173_s10, 256, %s1171_s20, %s444_s5, %s932_s26, %s932_s26, %s933_s8  }
 0x2db PF: > { %s472_s12 = sand.u32 1, %s908_s15   ;;  %p1238_p1 = scmp.ne.s32.totalorder %s1227_s22, 0 }
 0x2dc   : > { %p1239_p5 = scmp.ge.s32.totalorder %s920_s18, 2  ;;  %s473_s14 = scalar_lea.sflag [#allocation4], %s472_s12 }
 0x2de   : > { %p704_p2 = pnand %p1239_p5, %p1238_p1 }
 0x2e0   : > { %903 = dma.done.wait (!%p704_p2), %s473_s14, 256  }
 0x2e1   : > { %905 = vsyncadd (!%p704_p2), %s473_s14, 4294967040  ;;  %p20_p6 = scmp.ge.s32.totalorder %s1015_s27, 4   ;;  %s1240_s15 = smov %s912_s16 }
 0x2e2   : > { %s1241_s16 = smov %s916_s17  ;;  %s1242_s17 = smov %s1046_s24 }
 0x2e3   : > { %s1243_s18 = smov %s1015_s27  ;;  %22 = sbr.rel (!%p20_p6) target bundleno = 9 (0x9), region = 98 }
 0x2ea   :  { %478 = vsyncpa [#allocation3], 1 }
 0x2eb   :  { %480 = vsyncpa [#allocation3 + $0x1], 1 }
 0x2ec   :  { %481 = vsyncpa [#allocation6], 1 }
 0x2ed   :  { %483 = vsyncpa [#allocation6 + $0x1], 1 }
 0x2ee   :  { %484 = vsyncpa [#allocation4], 1 }
 0x2ef   :  { %486 = vsyncpa [#allocation4 + $0x1], 1 }

</bundles_post_ra>
